<compile_context>
chip_gen: v7x
topology: tpu7x:2x2x1
jax: 0.10.0
libtpu: 0.0.40
codegen_flags: <defaults>
</compile_context>

<pallas_src>
import functools

import jax
import jax.numpy as jnp
from jax.experimental import pallas as pl
from jax.experimental.pallas import tpu as pltpu

_MIB = 1024 * 1024


def _polar_kernel_t(x_ref, o_ref, *, precision: float):
    """Per-tile cart->polar on the transposed view. x_ref / o_ref: (D, TILE_L)."""
    x = x_ref[...]                                      # (D, L), native dtype
    xf = x.astype(jnp.float32)

    # r = sum over the D sublane rows of x^2 (ALL features, per spec) + precision.
    r = jnp.sum(xf * xf, axis=0, keepdims=True) + jnp.float32(precision)   # (1, L)
    # theta = atan2(x1, x0): full-lane-width transcendental.
    theta = jnp.arctan2(xf[1:2, :], xf[0:1, :])                            # (1, L)

    # Full-lane-width row stores: row0 = r, row1 = theta, rows 2: pass-through
    # in their native dtype (no f32 round trip).
    o_ref[0:1, :] = r.astype(o_ref.dtype)
    o_ref[1:2, :] = theta.astype(o_ref.dtype)
    if x.shape[0] > 2:
        o_ref[2:, :] = x[2:, :]


def _round_up(v: int, m: int) -> int:
    return -(-v // m) * m


def _vmem_capacity_bytes() -> int:
    try:
        return int(pltpu.get_tpu_info().vmem_capacity_bytes)
    except Exception:  # be robust if the query is unavailable on this build
        return 64 * _MIB            # conservative (v7x-sized) fallback


def _sublane_padded_rows(d: int, itemsize: int) -> int:
    """Rows a (d, L) VMEM tile actually occupies after dtype sublane tiling."""
    min_rows = {4: 8, 2: 16, 1: 32}.get(itemsize, 8)
    return max(min_rows, _round_up(d, min_rows))


def _choose_tile_lanes(n: int, d: int, itemsize: int, requested) -> int:
    """Pick the lane tile: multiple of 128 (or the full lane extent n)."""
    if n <= 128:
        return n                    # full extent is always a legal block dim
    if requested is not None:
        tile = int(requested)
    else:
        vmem = _vmem_capacity_bytes()
        # ~8 MiB blocks on v5e/v6e (128 MiB VMEM), ~4 MiB on v7x (64 MiB VMEM).
        target_bytes = (8 if vmem >= 96 * _MIB else 4) * _MIB
        bytes_per_lane = _sublane_padded_rows(d, itemsize) * itemsize
        tile = target_bytes // max(1, bytes_per_lane)
    # Keep >= 2 grid blocks so the "parallel" axis can shard across v7x's 2 TCs
    # (no-op on single-TC v5e/v6e).
    half = _round_up(-(-n // 2), 128)
    tile = min(tile, half)
    tile = max(128, (tile // 128) * 128)
    return tile


def polar_forward_t(xt: jax.Array, precision: float = 1e-6, tile_lanes=None) -> jax.Array:
    """Lane-dense fast path: xt is [D, N] (features x points); returns [D, N]."""
    d, n = xt.shape
    if d < 2:
        raise ValueError("PolarTransf requires at least 2 feature dims")
    itemsize = jnp.dtype(xt.dtype).itemsize
    tile = _choose_tile_lanes(n, d, itemsize, tile_lanes)

    block_bytes = _sublane_padded_rows(d, itemsize) * tile * itemsize
    # in + out, double-buffered, plus headroom; well under VMEM on all chips.
    vmem_limit = int(4 * block_bytes + 16 * _MIB)

    kernel = functools.partial(_polar_kernel_t, precision=precision)
    return pl.pallas_call(
        kernel,
        out_shape=jax.ShapeDtypeStruct((d, n), xt.dtype),
        grid_spec=pltpu.PrefetchScalarGridSpec(
            num_scalar_prefetch=0,
            grid=(pl.cdiv(n, tile),),
            # TODO(synk): on v5e, sweep pipeline_mode=pl.Buffered(3) on the
            # input spec if a profile shows exposed DMA for this streaming op.
            in_specs=[pl.BlockSpec((d, tile), lambda i: (0, i))],
            out_specs=pl.BlockSpec((d, tile), lambda i: (0, i)),
        ),
        compiler_params=pltpu.CompilerParams(
            dimension_semantics=("parallel",),
            vmem_limit_bytes=vmem_limit,
        ),
    )(xt)


def polar_forward(x: jax.Array, precision: float = 1e-6, tile_lanes=None) -> jax.Array:
    """Module-faithful API: x is [N, D] (points x features); returns [N, D].

    Relayouts to the lane-dense [D, N] view for the kernel.  The two wrapper
    transposes are XLA relayout passes outside the kernel; bandwidth-critical
    callers should keep their data as [D, N] and call polar_forward_t directly.
    """
    yt = polar_forward_t(x.T, precision=precision, tile_lanes=tile_lanes)
    return yt.T


def polar_forward_ref(x: jax.Array, precision: float = 1e-6) -> jax.Array:
    """Pure-JAX reference mirroring the PyTorch module exactly."""
    r = jnp.sum(x.astype(jnp.float32) ** 2, axis=1) + precision
    theta = jnp.arctan2(x[:, 1].astype(jnp.float32), x[:, 0].astype(jnp.float32))
    return jnp.concatenate(
        [r[:, None].astype(x.dtype), theta[:, None].astype(x.dtype), x[:, 2:]],
        axis=-1,
    )


if __name__ == "__main__":
    key = jax.random.PRNGKey(0)
    k1, k2, k3 = jax.random.split(key, 3)

    # Case 1: small [N, dim] point cloud, f32, module-faithful API.
    x1 = jax.random.normal(k1, (16, 4), dtype=jnp.float32)
    y1 = jax.block_until_ready(polar_forward(x1, precision=1e-6))
    assert y1.shape == x1.shape
    assert jnp.allclose(y1, polar_forward_ref(x1), atol=1e-5, rtol=1e-5), "mismatch (case 1)"

    # Case 2: ragged N (not a multiple of 8/128) and odd D.
    x2 = jax.random.normal(k2, (37, 3), dtype=jnp.float32)
    y2 = jax.block_until_ready(polar_forward(x2, precision=1e-6))
    assert y2.shape == x2.shape
    assert jnp.allclose(y2, polar_forward_ref(x2), atol=1e-5, rtol=1e-5), "mismatch (case 2)"

    # Case 3: lane-dense fast path on [D, N] data with a ragged final 128-lane
    # block (exercises Pallas' masked final-block write, no pad/slice).
    x3 = jax.random.normal(k3, (300, 4), dtype=jnp.float32)
    y3t = jax.block_until_ready(polar_forward_t(x3.T, precision=1e-6, tile_lanes=128))
    assert y3t.shape == (4, 300)
    assert jnp.allclose(y3t.T, polar_forward_ref(x3), atol=1e-5, rtol=1e-5), "mismatch (case 3)"

    print("KERNEL_OK")
</pallas_src>

<mosaic_0001>
module attributes {stable_mosaic.version = 11 : i64} {
  func.func @_polar_kernel_t(%arg0: i32, %arg1: memref<4x16xf32, #tpu.memory_space<vmem>>, %arg2: memref<4x16xf32, #tpu.memory_space<vmem>>) attributes {dimension_semantics = [#tpu.dimension_semantics<parallel>], iteration_bounds = array<i64: 1>, scalar_prefetch = 0 : i64, scratch_operands = 0 : i64, tpu.core_type = #tpu.core_type<tc>, window_params = [{transform_indices = @transform_0, window_bounds = array<i64: 4, 16>}, {transform_indices = @transform_1, window_bounds = array<i64: 4, 16>}]} {
    %c0 = arith.constant 0 : index
    %c0_0 = arith.constant 0 : index
    %0 = vector.load %arg1[%c0, %c0_0] : memref<4x16xf32, #tpu.memory_space<vmem>>, vector<4x16xf32>
    %1 = arith.mulf %0, %0 : vector<4x16xf32>
    %cst = arith.constant dense<0.000000e+00> : vector<16xf32>
    %2 = vector.multi_reduction <add>, %1, %cst [0] : vector<4x16xf32> to vector<16xf32>
    %3 = vector.shape_cast %2 : vector<16xf32> to vector<1x16xf32>
    %cst_1 = arith.constant 9.99999997E-7 : f32
    %4 = vector.broadcast %cst_1 : f32 to vector<1x16xf32>
    %5 = arith.addf %3, %4 : vector<1x16xf32>
    %6 = vector.extract_strided_slice %0 {offsets = [1, 0], sizes = [1, 16], strides = [1, 1]} : vector<4x16xf32> to vector<1x16xf32>
    %7 = vector.extract_strided_slice %0 {offsets = [0, 0], sizes = [1, 16], strides = [1, 1]} : vector<4x16xf32> to vector<1x16xf32>
    %8 = math.atan2 %6, %7 : vector<1x16xf32>
    %c0_2 = arith.constant 0 : index
    %c0_3 = arith.constant 0 : index
    %9 = vector.load %arg2[%c0_2, %c0_3] : memref<4x16xf32, #tpu.memory_space<vmem>>, vector<1x16xf32>
    tpu.vector_store %arg2[%c0_2, %c0_3], %5 {strides = array<i32>} : memref<4x16xf32, #tpu.memory_space<vmem>>, vector<1x16xf32>,
    %c1 = arith.constant 1 : index
    %c0_4 = arith.constant 0 : index
    %10 = vector.load %arg2[%c1, %c0_4] : memref<4x16xf32, #tpu.memory_space<vmem>>, vector<1x16xf32>
    tpu.vector_store %arg2[%c1, %c0_4], %8 {strides = array<i32>} : memref<4x16xf32, #tpu.memory_space<vmem>>, vector<1x16xf32>,
    %11 = vector.extract_strided_slice %0 {offsets = [2, 0], sizes = [2, 16], strides = [1, 1]} : vector<4x16xf32> to vector<2x16xf32>
    %c2 = arith.constant 2 : index
    %c0_5 = arith.constant 0 : index
    %12 = vector.load %arg2[%c2, %c0_5] : memref<4x16xf32, #tpu.memory_space<vmem>>, vector<2x16xf32>
    tpu.vector_store %arg2[%c2, %c0_5], %11 {strides = array<i32>} : memref<4x16xf32, #tpu.memory_space<vmem>>, vector<2x16xf32>,
    return
  }
  func.func @transform_0(%arg0: i32) -> (i32, i32) {
    %c0_i32 = arith.constant 0 : i32
    %c0_i32_0 = arith.constant 0 : i32
    return %c0_i32, %arg0 : i32, i32
  }
  func.func @transform_1(%arg0: i32) -> (i32, i32) {
    %c0_i32 = arith.constant 0 : i32
    %c0_i32_0 = arith.constant 0 : i32
    return %c0_i32, %arg0 : i32, i32
  }
}

</mosaic_0001>

<bundles_post_ra>
// kernel: tpu_custom_call.1
= control target key start
LH: loop header
LB: loop body
LE: loop exit
PB: predicated region body
PF: predicated region fallthrough
CT: control target
= control target key end

     0   :  { %6 = vsyncpa [#allocation3], 0  ;;  %s206_s0 = inlined_call_operand.hbm [shape: f32[4,16], index: 0, kind: input, shape index: {}]   ;;  %s207_s1 = inlined_call_operand.hbm [shape: f32[4,16], index: 1, kind: output, shape index: {}]  }
   0x1   :  { %7 = vsyncpa [#allocation4], 0  ;;  %s157_s6 = smov [#allocation2]   ;;  %s109_s10 = scalar_lea.hbm %s206_s0, 64 }
   0x2   :  { %s14_s7 = sshll.u32 %s157_s6, 4  ;;  %p110_p0 = scmp.ne.s32.totalorder %s206_s0, %s109_s10  ;;  %s15_s7 = int_to_ptr.vmem [resolvable:$true] %s14_s7 }
   0x3   :  { %p113_p1 = scmp.lt.u32.totalorder %s109_s10, %s206_s0 }
   0x5   :  { %p115_p2 = pnand %p113_p1, %p110_p0 }
   0x7   :  { %118 = shalt.err (!%p115_p2)
}
   0x8   :  { %s119_s15 = scalar_lea.vmem %s15_s7, 64  ;;  %p124_p4 = scmp.lt.s32.totalorder %s15_s7, %s15_s7 }
   0x9   :  { %p120_p3 = scmp.ne.s32.totalorder %s15_s7, %s119_s15  ;;  %p125_p5 = scmp.lt.s32.totalorder %s119_s15, %s119_s15 }
   0xb   :  { %p126_p6 = por %p125_p5, %p124_p4 }
   0xd   :  { %p127_p7 = pnand %p126_p6, %p120_p3 }
   0xf   :  { %130 = shalt.err (!%p127_p7)
}
  0x10   :  { %17 = dma.hbm_to_vmem [thread:$0]  %s206_s0, 64, %s15_s7, [#allocation3]  }
  0x11   :  { %153 = dma.done.wait [#allocation3], 64  }
  0x12   :  { %154 = vsyncadd [#allocation3], 4294967232  ;;  %vm86_vm0 = vcmask 125954   ;;  %v183_v0 = vld [vmem:[#allocation2] sm:$0xf]  ;;  %vm23_vm1 = vcmask 125952  }
  0x13   :  { %v22_v1 = vmul.f32 %v183_v0, %v183_v0  ;;  %v33_v2 = vrot.slane %v183_v0, 7  ;;  %v36_v3 = vand.u32 2147483647, %v183_v0  ;;  %87 = vst.msk [vmem:[#allocation5] sm:$0xc] %vm86_vm0, %v183_v0  ;;  %vm82_vm2 = vcmask 122880  }
  0x14   :  { %vm70_vm6 = vcmp.ne.f32.partialorder %v183_v0, %v183_v0  ;;  %v158_v38 = vmov 0.0   ;;  %vm67_vm10 = vcmp.eq.f32.partialorder %v183_v0, 0.0  ;;  %v159_v41 = vmov 0.7853982   ;;  %s160_s0 = smov [#allocation5]  }
  0x15   :  { %v24_v4 = vsel %vm23_vm1, %v22_v1, 0.0  ;;  %v35_v5 = vand.u32 2147483647, %v33_v2  ;;  %vm65_vm4 = vcmp.lt.s32.totalorder %v33_v2, 0  ;;  %vm69_vm5 = vcmp.ne.f32.partialorder %v33_v2, %v33_v2  ;;  %s94_s18 = sshll.u32 %s160_s0, 4  ;;  %s95_s18 = int_to_ptr.vmem [resolvable:$true] %s94_s18 }
  0x16   :  { %v25_v6 = vrot.slane %v24_v4, 4  ;;  %vm62_vm7 = vcmp.lt.f32.partialorder %v33_v2, 0.0  ;;  %vm76_vm9 = vcmp.eq.s32.totalorder %v36_v3, inf  ;;  %v66_v39 = vsel %vm65_vm4, 3.1415927, %v158_v38  ;;  %vm71_vm11 = vmor %vm69_vm5, %vm70_vm6  ;;  %s131_s19 = scalar_lea.vmem %s95_s18, 64  ;;  %p136_p9 = scmp.lt.s32.totalorder %s95_s18, %s95_s18 }
  0x17   :  { %v38_v7 = vmax.f32 %v35_v5, %v36_v3  ;;  %v37_v13 = vmin.f32 %v35_v5, %v36_v3  ;;  %vm59_vm3 = vcmp.gt.f32.partialorder %v36_v3, %v35_v5  ;;  %vm75_vm8 = vcmp.eq.s32.totalorder %v35_v5, inf  ;;  %p132_p8 = scmp.ne.s32.totalorder %s95_s18, %s131_s19  ;;  %p137_p10 = scmp.lt.s32.totalorder %s131_s19, %s131_s19 }
  0x18   :  { %v26_v8 = vadd.f32 %v25_v6, %v24_v4  ;;  %v74_v42 = vsel %vm62_vm7, 2.3561945, %v159_v41  ;;  %vm77_vm12 = vmand %vm75_vm8, %vm76_vm9  ;;  %v80_v45 = vand.u32 2147483648, %v183_v0  ;;  %vm84_vm13 = vcmask 123905  }
  0x19   :  { %107 = vrcp.f32 %v38_v7  ;;  %p138_p11 = por %p137_p10, %p136_p9 }
  0x1a   :  { %v27_v9 = vrot.slane %v26_v8, 2 }
  0x1b   :  { %p139_p12 = pnand %p138_p11, %p132_p8 }
  0x1c   :  { %v28_v10 = vadd.f32 %v27_v9, %v26_v8 }
  0x1e   :  { %v29_v11 = vrot.slane %v28_v10, 1 }
  0x20   :  { %v30_v12 = vadd.f32 %v29_v11, %v28_v10 }
  0x22   :  { %v31_v14 = vadd.f32 1e-06, %v30_v12 }
  0x23   :  { %v108_v15 = vpop.eup %107 }
  0x24   :  { %83 = vst.msk [vmem:[#allocation5] sm:$0x1] %vm82_vm2, %v31_v14  ;;  %v40_v16 = vmul.f32 %v108_v15, %v37_v13 }
  0x26   :  { %v41_v17 = vmul.f32 %v40_v16, %v40_v16 }
  0x28   :  { %v42_v18 = vmul.f32 0.002785687, %v41_v17 }
  0x2a   :  { %v43_v19 = vadd.f32 -0.015866, %v42_v18 }
  0x2c   :  { %v44_v20 = vmul.f32 %v43_v19, %v41_v17 }
  0x2e   :  { %v45_v21 = vadd.f32 0.04247222, %v44_v20 }
  0x30   :  { %v46_v22 = vmul.f32 %v45_v21, %v41_v17 }
  0x32   :  { %v47_v23 = vadd.f32 -0.074975304, %v46_v22 }
  0x34   :  { %v48_v24 = vmul.f32 %v47_v23, %v41_v17 }
  0x36   :  { %v49_v25 = vadd.f32 0.1064488, %v48_v24 }
  0x38   :  { %v50_v26 = vmul.f32 %v49_v25, %v41_v17 }
  0x3a   :  { %v51_v27 = vadd.f32 -0.14207031, %v50_v26 }
  0x3c   :  { %v52_v28 = vmul.f32 %v51_v27, %v41_v17 }
  0x3e   :  { %v53_v29 = vadd.f32 0.19993454, %v52_v28 }
  0x40   :  { %v54_v30 = vmul.f32 %v53_v29, %v41_v17 }
  0x42   :  { %v55_v31 = vadd.f32 -0.33333147, %v54_v30 }
  0x44   :  { %v56_v32 = vmul.f32 %v55_v31, %v41_v17 }
  0x46   :  { %v57_v33 = vmul.f32 %v56_v32, %v40_v16 }
  0x48   :  { %v58_v34 = vadd.f32 %v57_v33, %v40_v16 }
  0x4a   :  { %v60_v35 = vsub.f32 1.5707964, %v58_v34 }
  0x4c   :  { %v61_v36 = vsel %vm59_vm3, %v60_v35, %v58_v34 }
  0x4d   :  { %v63_v37 = vsub.f32 3.1415927, %v61_v36 }
  0x4f   :  { %v64_v40 = vsel %vm62_vm7, %v63_v37, %v61_v36 }
  0x50   :  { %v68_v43 = vsel %vm67_vm10, %v66_v39, %v64_v40 }
  0x51   :  { %v72_v44 = vsel %vm71_vm11, nan, %v68_v43 }
  0x52   :  { %v78_v46 = vsel %vm77_vm12, %v74_v42, %v72_v44 }
  0x53   :  { %v79_v47 = vand.u32 2147483647, %v78_v46 }
  0x55   :  { %v81_v48 = vor.u32 %v80_v45, %v79_v47 }
  0x57   :  { %85 = vst.msk [vmem:[#allocation5] sm:$0x2] %vm84_vm13, %v81_v48 }
  0x58   :  { %142 = shalt.err (!%p139_p12)
}
  0x59   :  { %s143_s22 = scalar_lea.hbm %s207_s1, 64 }
  0x5a   :  { %p144_p13 = scmp.ne.s32.totalorder %s207_s1, %s143_s22  ;;  %p147_p0 = scmp.lt.u32.totalorder %s143_s22, %s207_s1 }
  0x5c   :  { %p149_p1 = pnand %p147_p0, %p144_p13 }
  0x5e   :  { %152 = shalt.err (!%p149_p1)
}
  0x5f   :  { %97 = dma.vmem_to_hbm [thread:$0]  %s95_s18, 64, %s207_s1, [#allocation4]  }
  0x60   :  { %155 = dma.done.wait [#allocation4], 64  }
  0x61   :  { %156 = vsyncadd [#allocation4], 4294967232 }
  0x62   :  { %101 = vsyncpa [#allocation3], 1 }
  0x63   :  { %102 = vsyncpa [#allocation4], 1 }

</bundles_post_ra>
